<compile_context>
chip_gen: v5e
topology: v5e:2x2
jax: 0.10.0
libtpu: 0.0.40
codegen_flags: <defaults>
</compile_context>

<pallas_src>
import jax
import jax.numpy as jnp
from jax.experimental import pallas as pl
from jax.experimental.pallas import tpu as pltpu


# ----------------------------- Pallas kernel --------------------------------
def _edge_sum_kernel(adj_ref, out_ref, acc_ref):
    """Accumulate per-graph edge sums over row tiles.

    adj_ref: (Bt, Nt, N) VMEM tile of the adjacency batch (narrow dtype ok).
    out_ref: (Bt, 1) f32 output tile, resident across the row-reduction axis.
    acc_ref: (Bt, 1) f32 VMEM scratch accumulator.
    """
    r = pl.program_id(1)

    @pl.when(r == 0)
    def _init():
        acc_ref[...] = jnp.zeros_like(acc_ref)

    # Cast to f32 *inside* the kernel so HBM traffic stays in the narrow dtype
    # while accumulation remains exact.
    a = adj_ref[...].astype(jnp.float32)                 # (Bt, Nt, N)
    lane_sums = jnp.sum(a, axis=-1)                      # (Bt, Nt)  lane (XLU) reduce
    acc_ref[...] += jnp.sum(lane_sums, axis=-1, keepdims=True)  # (Bt, 1)

    @pl.when(r == pl.num_programs(1) - 1)
    def _finalize():
        out_ref[...] = acc_ref[...]


# ----------------------------- Tile selection --------------------------------
def _pick_tiles(B, N, dtype_bytes, max_tile_bytes):
    """Pick (Bt, Nt) so one (Bt, Nt, N) input buffer stays under max_tile_bytes
    (BlockSpec double-buffers it) while respecting the (8, 128) / full-dim
    block-shape rules."""
    # Batch tile: keep full B unless B is large; only shrink to 8-aligned
    # divisors so the (Bt, 1) output/accumulator tile stays sublane-aligned.
    Bt = B
    if B % 8 == 0:
        while (Bt > 8 and Bt % 2 == 0 and (Bt // 2) % 8 == 0
               and B % (Bt // 2) == 0
               and Bt * 8 * N * dtype_bytes > max_tile_bytes):
            Bt //= 2

    # Row tile: largest multiple of 8 dividing N that fits the per-buffer
    # budget; fall back to the full dim (always a legal block shape).
    if N % 8 == 0:
        limit_rows = max(8, max_tile_bytes // max(1, Bt * N * dtype_bytes))
        Nt = 8
        for cand in range(8, N + 1, 8):
            if N % cand == 0 and cand <= limit_rows:
                Nt = cand
    else:
        Nt = N
    return Bt, Nt


# ------------------------------ Host wrapper ---------------------------------
def example_metric_stats(adj_batch: jnp.ndarray,
                         max_tile_bytes: int = 8 * 1024 * 1024) -> jnp.ndarray:
    """Per-graph edge-count statistic (sum of adjacency entries) via Pallas.

    adj_batch: (B, N, N) dense adjacency batch.  Feed it in a narrow dtype
               (bf16 / int8 / bool) -- the kernel casts to f32 on-chip, so HBM
               traffic stays narrow and accumulation stays exact.
               NOTE: for a symmetrized undirected adjacency this counts each
               edge twice; divide by 2 downstream if "#edges" is the metric.
    returns:   (B, 1) float32 per-graph sums.
    """
    B, N, N2 = adj_batch.shape
    assert N == N2, "expected square adjacency matrices"
    dtype_bytes = jnp.dtype(adj_batch.dtype).itemsize
    Bt, Nt = _pick_tiles(B, N, dtype_bytes, max_tile_bytes)
    grid = (B // Bt, N // Nt)

    cost = pl.CostEstimate(
        flops=B * N * N,                                  # one add per element
        transcendentals=0,
        bytes_accessed=B * N * N * dtype_bytes + B * 4)

    return pl.pallas_call(
        _edge_sum_kernel,
        out_shape=jax.ShapeDtypeStruct((B, 1), jnp.float32),
        grid_spec=pltpu.PrefetchScalarGridSpec(
            num_scalar_prefetch=0,
            grid=grid,
            in_specs=[pl.BlockSpec((Bt, Nt, N), lambda b, r: (b, r, 0))],
            out_specs=pl.BlockSpec((Bt, 1), lambda b, r: (b, 0)),
            scratch_shapes=[pltpu.VMEM((Bt, 1), jnp.float32)]),
        compiler_params=pltpu.CompilerParams(
            dimension_semantics=("parallel", "arbitrary"),
            vmem_limit_bytes=32 * 1024 * 1024),
        cost_estimate=cost,
    )(adj_batch)


# ------------------------------ Module port ---------------------------------
class SatSamplingMetrics:
    """JAX port of dgd.analysis.sat_utils.SatSamplingMetrics."""

    def __init__(self, dataloaders=None, metrics_list=()):
        self.metrics_list = list(metrics_list)

    def forward(self, generated_graphs, name, current_epoch, val_counter,
                save_graphs=True, test=False):
        """Compare generated_graphs list with test graphs.

        Matches the reference semantics: prints when 'example_metric' is
        requested and returns None.
        """
        if 'example_metric' in self.metrics_list:
            print('Computing example_metric stats..')
            # TODO(synk): the reference forward is a stub (print-only); the
            # Pallas reduction below is where the actual stats computation
            # would go.  Its result is not returned (matches the reference),
            # and we do not host-sync here so it can overlap a jit'd pipeline.
            example_metric_stats(generated_graphs)
        return None

    def __call__(self, *args, **kwargs):
        return self.forward(*args, **kwargs)

    def reset(self):
        pass


# --------------------------------- Demo -------------------------------------
if __name__ == "__main__":
    key = jax.random.PRNGKey(0)
    B, N = 2, 64  # 2 generated graphs, 64 nodes each (small demo shapes)

    # Deterministic synthetic "generated graphs": dense 0/1 adjacency batch.
    adj = jax.random.uniform(key, (B, N, N)) > 0.5
    adj = jnp.logical_or(adj, jnp.transpose(adj, (0, 2, 1)))       # symmetrize
    adj = jnp.logical_and(adj, ~jnp.eye(N, dtype=bool)[None])      # no self-loops
    adj = adj.astype(jnp.bfloat16)   # narrow dtype fed straight to the kernel

    ref = jnp.sum(adj.astype(jnp.float32), axis=(1, 2))[:, None]

    # Single-tile path (tile fits the budget -> grid (1, 1)).
    stats = example_metric_stats(adj)
    jax.block_until_ready(stats)
    assert jnp.allclose(stats, ref), (stats, ref)

    # Force row-tiling (small per-buffer budget) to exercise the pipelined
    # accumulator path: grid (1, 4) with Nt = 16.
    stats_tiled = example_metric_stats(adj, max_tile_bytes=4096)
    jax.block_until_ready(stats_tiled)
    assert jnp.allclose(stats_tiled, ref), (stats_tiled, ref)

    # Exercise the module's forward (reproduces reference control flow).
    metrics = SatSamplingMetrics(dataloaders=None,
                                 metrics_list=['example_metric'])
    out = metrics(adj, name="sat", current_epoch=0, val_counter=0,
                  save_graphs=False, test=False)
    assert out is None  # reference forward returns None

    print("KERNEL_OK")
</pallas_src>

<mosaic_0001>
module attributes {stable_mosaic.version = 11 : i64} {
  func.func @_edge_sum_kernel(%arg0: i32, %arg1: i32, %arg2: memref<2x64x64xbf16, #tpu.memory_space<vmem>>, %arg3: memref<2x1xf32, #tpu.memory_space<vmem>>, %arg4: memref<2x1xf32, #tpu.memory_space<vmem>>) attributes {dimension_semantics = [#tpu.dimension_semantics<parallel>, #tpu.dimension_semantics<arbitrary>], iteration_bounds = array<i64: 1, 1>, scalar_prefetch = 0 : i64, scratch_operands = 1 : i64, tpu.core_type = #tpu.core_type<tc>, window_params = [{transform_indices = @transform_0, window_bounds = array<i64: 2, 64, 64>}, {transform_indices = @transform_1, window_bounds = array<i64: 2, 1>}]} {
    %c0_i32 = arith.constant 0 : i32
    %0 = arith.cmpi eq, %arg1, %c0_i32 : i32
    %1 = arith.extui %0 : i1 to i32
    %c0_i32_0 = arith.constant 0 : i32
    %2 = arith.cmpi ne, %1, %c0_i32_0 : i32
    scf.if %2 {
      %cst_10 = arith.constant 0.000000e+00 : f32
      %14 = vector.broadcast %cst_10 : f32 to vector<2x1xf32>
      %c0_11 = arith.constant 0 : index
      %c0_12 = arith.constant 0 : index
      %15 = vector.load %arg4[%c0_11, %c0_12] : memref<2x1xf32, #tpu.memory_space<vmem>>, vector<2x1xf32>
      tpu.vector_store %arg4[%c0_11, %c0_12], %14 {strides = array<i32>} : memref<2x1xf32, #tpu.memory_space<vmem>>, vector<2x1xf32>,
    } else {
    }
    %c0 = arith.constant 0 : index
    %c0_1 = arith.constant 0 : index
    %c0_2 = arith.constant 0 : index
    %3 = vector.load %arg2[%c0, %c0_1, %c0_2] : memref<2x64x64xbf16, #tpu.memory_space<vmem>>, vector<2x64x64xbf16>
    %4 = arith.extf %3 : vector<2x64x64xbf16> to vector<2x64x64xf32>
    %cst = arith.constant dense<0.000000e+00> : vector<2x64xf32>
    %5 = vector.multi_reduction <add>, %4, %cst [2] : vector<2x64x64xf32> to vector<2x64xf32>
    %c0_3 = arith.constant 0 : index
    %c0_4 = arith.constant 0 : index
    %6 = vector.load %arg4[%c0_3, %c0_4] : memref<2x1xf32, #tpu.memory_space<vmem>>, vector<2x1xf32>
    %cst_5 = arith.constant dense<0.000000e+00> : vector<2xf32>
    %7 = vector.multi_reduction <add>, %5, %cst_5 [1] : vector<2x64xf32> to vector<2xf32>
    %8 = vector.shape_cast %7 : vector<2xf32> to vector<2x1xf32>
    %9 = arith.addf %6, %8 : vector<2x1xf32>
    %c0_6 = arith.constant 0 : index
    %c0_7 = arith.constant 0 : index
    %10 = vector.load %arg4[%c0_6, %c0_7] : memref<2x1xf32, #tpu.memory_space<vmem>>, vector<2x1xf32>
    tpu.vector_store %arg4[%c0_6, %c0_7], %9 {strides = array<i32>} : memref<2x1xf32, #tpu.memory_space<vmem>>, vector<2x1xf32>,
    %c0_i32_8 = arith.constant 0 : i32
    %11 = arith.cmpi eq, %arg1, %c0_i32_8 : i32
    %12 = arith.extui %11 : i1 to i32
    %c0_i32_9 = arith.constant 0 : i32
    %13 = arith.cmpi ne, %12, %c0_i32_9 : i32
    scf.if %13 {
      %c0_10 = arith.constant 0 : index
      %c0_11 = arith.constant 0 : index
      %14 = vector.load %arg4[%c0_10, %c0_11] : memref<2x1xf32, #tpu.memory_space<vmem>>, vector<2x1xf32>
      %c0_12 = arith.constant 0 : index
      %c0_13 = arith.constant 0 : index
      %15 = vector.load %arg3[%c0_12, %c0_13] : memref<2x1xf32, #tpu.memory_space<vmem>>, vector<2x1xf32>
      tpu.vector_store %arg3[%c0_12, %c0_13], %14 {strides = array<i32>} : memref<2x1xf32, #tpu.memory_space<vmem>>, vector<2x1xf32>,
    } else {
    }
    return
  }
  func.func @transform_0(%arg0: i32, %arg1: i32) -> (i32, i32, i32) {
    %c0_i32 = arith.constant 0 : i32
    %c0_i32_0 = arith.constant 0 : i32
    return %arg0, %arg1, %c0_i32 : i32, i32, i32
  }
  func.func @transform_1(%arg0: i32, %arg1: i32) -> (i32, i32) {
    %c0_i32 = arith.constant 0 : i32
    %c0_i32_0 = arith.constant 0 : i32
    return %arg0, %c0_i32 : i32, i32
  }
}

</mosaic_0001>

<bundles_post_ra>
// kernel: tpu_custom_call.1
= control target key start
LH: loop header
LB: loop body
LE: loop exit
PB: predicated region body
PF: predicated region fallthrough
CT: control target
= control target key end

     0   :  { %6 = vsyncpa [#allocation4], 0  ;;  %s263_s9 = smov [#allocation3]   ;;  %s264_s11 = smov 64   ;;  %s306_s0 = inlined_call_operand.hbm [shape: bf16[2,64,64], index: 0, kind: input, shape index: {}]   ;;  %s307_s1 = inlined_call_operand.vmem [shape: f32[2,1], index: 1, kind: output, shape index: {}]  }
   0x1   :  { %s11_s8 = sshll.u32 %s306_s0, 4  ;;  %s13_s10 = sshll.u32 %s263_s9, 4  ;;  %s12_s8 = int_to_ptr.hbm [resolvable:$true] %s11_s8  ;;  %s14_s10 = int_to_ptr.vmem [resolvable:$true] %s13_s10 }
   0x2   :  { %s265_s12 = smov 4  }
   0x3   :  { %19 = dma.hbm_to_vmem [thread:$0]  %s12_s8, 1024, %s14_s10, [#allocation4], %s264_s11, %s264_s11, %s265_s12  }
   0x4   :  { %261 = dma.done.wait [#allocation4], 1024  }
   0x5   :  { %262 = vsyncadd [#allocation4], 4294966272  ;;  %v229_v0 = vld [vmem:[#allocation3 + $0x20] sm:$0xff]   ;;  %vm62_vm0 = vcmask 523264   ;;  %v226_v2 = vld [vmem:[#allocation3 + $0x8] sm:$0xff]   ;;  %vm28_vm1 = vcmask 1024   ;;  %v128_v49 = vlaneseq }
   0x6   :  { %v195_v1 = vld [vmem:[#allocation3] sm:$0xff]   ;;  %v212_v3 = vunpack.c.l.bf16 %v229_v0  ;;  %v200_v5 = vunpack.c.l.bf16 %v226_v2  ;;  %v230_v9 = vld [vmem:[#allocation3 + $0x28] sm:$0xff]   ;;  %v213_v10 = vunpack.c.h.bf16 %v229_v0  ;;  %v227_v16 = vld [vmem:[#allocation3 + $0x10] sm:$0xff]   ;;  %v201_v18 = vunpack.c.h.bf16 %v226_v2 }
   0x7   :  { %v196_v4 = vunpack.c.l.bf16 %v195_v1  ;;  %v197_v11 = vunpack.c.h.bf16 %v195_v1  ;;  %v216_v12 = vunpack.c.l.bf16 %v230_v9  ;;  %v217_v17 = vunpack.c.h.bf16 %v230_v9  ;;  %v231_v23 = vld [vmem:[#allocation3 + $0x30] sm:$0xff]   ;;  %v232_v30 = vld [vmem:[#allocation3 + $0x38] sm:$0xff]  }
   0x8   :  { %v87_v6 = vsel %vm62_vm0, %v212_v3, 0.0  ;;  %v69_v8 = vsel %vm62_vm0, %v200_v5, 0.0  ;;  %v90_v13 = vsel %vm62_vm0, %v213_v10, 0.0  ;;  %v204_v19 = vunpack.c.l.bf16 %v227_v16  ;;  %v228_v31 = vld [vmem:[#allocation3 + $0x18] sm:$0xff]  }
   0x9   :  { %v63_v7 = vsel %vm62_vm0, %v196_v4, 0.0  ;;  %88 = vadd.xlane.f32.xlu1 %v87_v6  ;;  %70 = vadd.xlane.f32.xlu2 %v69_v8  ;;  %v66_v14 = vsel %vm62_vm0, %v197_v11, 0.0  ;;  %v93_v15 = vsel %vm62_vm0, %v216_v12, 0.0  ;;  %v96_v20 = vsel %vm62_vm0, %v217_v17, 0.0 }
   0xa   :  { %64 = vadd.xlane.f32.xlu0 %v63_v7  ;;  %v72_v21 = vsel %vm62_vm0, %v201_v18, 0.0  ;;  %v75_v22 = vsel %vm62_vm0, %v204_v19, 0.0  ;;  %v205_v24 = vunpack.c.h.bf16 %v227_v16  ;;  %v220_v25 = vunpack.c.l.bf16 %v231_v23 }
   0xb   :  { %v221_v26 = vunpack.c.h.bf16 %v231_v23  ;;  %v224_v32 = vunpack.c.l.bf16 %v232_v30  ;;  %v208_v33 = vunpack.c.l.bf16 %v228_v31  ;;  %v209_v34 = vunpack.c.h.bf16 %v228_v31 }
   0xc   :  { %v78_v27 = vsel %vm62_vm0, %v205_v24, 0.0  ;;  %v99_v28 = vsel %vm62_vm0, %v220_v25, 0.0  ;;  %v225_v38 = vunpack.c.h.bf16 %v232_v30  ;;  %v266_v46 = vmov 0.0  }
   0xd   :  { %v102_v29 = vsel %vm62_vm0, %v221_v26, 0.0  ;;  %v105_v35 = vsel %vm62_vm0, %v224_v32, 0.0  ;;  %v81_v36 = vsel %vm62_vm0, %v208_v33, 0.0  ;;  %v84_v37 = vsel %vm62_vm0, %v209_v34, 0.0  ;;  %29 = vst.msk [vmem:[#allocation2] sm:$0x3] %vm28_vm1, %v266_v46 }
   0xe   :  { %v108_v39 = vsel %vm62_vm0, %v225_v38, 0.0  ;;  %v129_v51 = vand.u32 127, %v128_v49  ;;  %vm133_vm2 = vcmask 130112   ;;  %vm137_vm3 = vcmask 195712  }
   0xf   :  { %vm141_vm4 = vcmask 261312   ;;  %vm145_vm5 = vcmask 326912   ;;  %vm149_vm6 = vcmask 392512   ;;  %vm153_vm7 = vcmask 458112  }
  0x10   :  { %v131_v52 = vadd.s32 4294967288, %v129_v51  ;;  %v135_v55 = vadd.s32 4294967280, %v129_v51  ;;  %v139_v58 = vadd.s32 4294967272, %v129_v51  ;;  %v143_v63 = vadd.s32 4294967264, %v129_v51 }
  0x11   :  { %91 = vadd.xlane.f32.xlu1 %v90_v13  ;;  %94 = vadd.xlane.f32.xlu2 %v93_v15  ;;  %v147_v2 = vadd.s32 4294967256, %v129_v51  ;;  %v151_v4 = vadd.s32 4294967248, %v129_v51  ;;  %vm157_vm8 = vcmask 523712   ;;  %vm174_vm9 = vcmask 1041409  }
  0x12   :  { %67 = vadd.xlane.f32.xlu0 %v66_v14  ;;  %v155_v14 = vadd.s32 4294967240, %v129_v51  ;;  %vm177_vm10 = vcmask 517120  }
  0x14   :  { %v111_v34 = vld [vmem:[#allocation2] sm:$0x3] }
  0x19   :  { %97 = vadd.xlane.f32.xlu1 %v96_v20  ;;  %76 = vadd.xlane.f32.xlu2 %v75_v22 }
  0x1a   :  { %73 = vadd.xlane.f32.xlu0 %v72_v21 }
  0x21   :  { %79 = vadd.xlane.f32.xlu1 %v78_v27  ;;  %103 = vadd.xlane.f32.xlu2 %v102_v29 }
  0x22   :  { %100 = vadd.xlane.f32.xlu0 %v99_v28 }
  0x29   :  { %106 = vadd.xlane.f32.xlu1 %v105_v35  ;;  %85 = vadd.xlane.f32.xlu2 %v84_v37 }
  0x2a   :  { %82 = vadd.xlane.f32.xlu0 %v81_v36 }
  0x32   :  { %109 = vadd.xlane.f32.xlu0 %v108_v39 }
  0x7c   :  { %v89_v40 = vpop.xlane.xlu1 %88  ;;  %v71_v42 = vpop.xlane.xlu2 %70 }
  0x7d   :  { %v65_v41 = vpop.xlane.xlu0 %64  ;;  %v159_v59 = vperm.slane %v89_v40, %v129_v51  ;;  %v136_v62 = vperm.slane %v71_v42, %v135_v55 }
  0x7e   :  { %v130_v60 = vperm.slane %v65_v41, %v129_v51 }
  0x84   :  { %v92_v43 = vpop.xlane.xlu1 %91  ;;  %v95_v45 = vpop.xlane.xlu2 %94 }
  0x85   :  { %v68_v44 = vpop.xlane.xlu0 %67  ;;  %v160_v61 = vperm.slane %v92_v43, %v131_v52  ;;  %v162_v3 = vperm.slane %v95_v45, %v135_v55 }
  0x86   :  { %v132_v57 = vperm.slane %v68_v44, %v131_v52 }
  0x87   :  { %v161_v6 = vsel %vm133_vm2, %v160_v61, %v159_v59 }
  0x88   :  { %v134_v0 = vsel %vm133_vm2, %v132_v57, %v130_v60  ;;  %v163_v15 = vsel %vm137_vm3, %v162_v3, %v161_v6 }
  0x89   :  { %v138_v8 = vsel %vm137_vm3, %v136_v62, %v134_v0 }
  0x8c   :  { %v98_v47 = vpop.xlane.xlu1 %97  ;;  %v77_v50 = vpop.xlane.xlu2 %76 }
  0x8d   :  { %v74_v48 = vpop.xlane.xlu0 %73  ;;  %v164_v7 = vperm.slane %v98_v47, %v139_v58  ;;  %v144_v9 = vperm.slane %v77_v50, %v143_v63 }
  0x8e   :  { %v140_v1 = vperm.slane %v74_v48, %v139_v58 }
  0x8f   :  { %v165_v18 = vsel %vm141_vm4, %v164_v7, %v163_v15 }
  0x90   :  { %v142_v11 = vsel %vm141_vm4, %v140_v1, %v138_v8 }
  0x91   :  { %v146_v20 = vsel %vm145_vm5, %v144_v9, %v142_v11 }
  0x94   :  { %v80_v54 = vpop.xlane.xlu1 %79  ;;  %v104_v56 = vpop.xlane.xlu2 %103 }
  0x95   :  { %v101_v53 = vpop.xlane.xlu0 %100  ;;  %v148_v12 = vperm.slane %v80_v54, %v147_v2  ;;  %v168_v19 = vperm.slane %v104_v56, %v147_v2 }
  0x96   :  { %v166_v10 = vperm.slane %v101_v53, %v143_v63 }
  0x97   :  { %v150_v23 = vsel %vm149_vm6, %v148_v12, %v146_v20 }
  0x98   :  { %v167_v21 = vsel %vm145_vm5, %v166_v10, %v165_v18 }
  0x99   :  { %v169_v27 = vsel %vm149_vm6, %v168_v19, %v167_v21 }
  0x9c   :  { %v107_v13 = vpop.xlane.xlu1 %106  ;;  %v86_v17 = vpop.xlane.xlu2 %85 }
  0x9d   :  { %v83_v5 = vpop.xlane.xlu0 %82  ;;  %v170_v22 = vperm.slane %v107_v13, %v151_v4  ;;  %v156_v24 = vperm.slane %v86_v17, %v155_v14 }
  0x9e   :  { %v152_v16 = vperm.slane %v83_v5, %v151_v4 }
  0x9f   :  { %v171_v29 = vsel %vm153_vm7, %v170_v22, %v169_v27 }
  0xa0   :  { %v154_v25 = vsel %vm153_vm7, %v152_v16, %v150_v23 }
  0xa1   :  { %v158_v30 = vsel %vm157_vm8, %v156_v24, %v154_v25 }
  0xa5   :  { %v110_v26 = vpop.xlane.xlu0 %109 }
  0xa6   :  { %v172_v28 = vperm.slane %v110_v26, %v155_v14 }
  0xa8   :  { %v173_v31 = vsel %vm157_vm8, %v172_v28, %v171_v29 }
  0xa9   :  { %v175_v32 = vsel %vm174_vm9, %v173_v31, %v158_v30 }
  0xaa   :  { %v178_v33 = vsel %vm177_vm10, %v175_v32, 0.0 }
  0xab   :  { %179 = vadd.xlane.f32.xlu1 %v178_v33 }
 0x11e   :  { %v180_v35 = vpop.xlane.xlu1 %179 }
 0x11f   :  { %v181_v36 = vadd.f32 %v180_v35, %v111_v34 }
 0x121   :  { %183 = vst.msk [vmem:[#allocation2] sm:$0x3] %vm28_vm1, %v181_v36 }
 0x128   :  { %v187_v37 = vld [vmem:[#allocation2] sm:$0x3] }
 0x129   :  { %188 = vst.msk [vmem:[%s307_s1] sm:$0x3] %vm28_vm1, %v187_v37 }
 0x12a   :  { %193 = vsyncpa [#allocation4], 1 }

</bundles_post_ra>
